<compile_context>
chip_gen: v5e
topology: v5e:2x2
jax: 0.10.0
libtpu: 0.0.40
codegen_flags: <defaults>
</compile_context>

<pallas_src>
import functools

import numpy as np
import jax
import jax.numpy as jnp
from jax.experimental import pallas as pl
from jax.experimental.pallas import tpu as pltpu


# ------------------------- small helpers -------------------------

@functools.lru_cache(maxsize=1)
def _vmem_limit_bytes():
    """Generation-aware per-call VMEM budget: min(32 MiB, physical VMEM / 2)."""
    cap = 128 * 1024 * 1024
    try:
        cap = int(getattr(pltpu.get_tpu_info(), "vmem_capacity_bytes", cap))
    except Exception:
        pass
    return min(32 * 1024 * 1024, cap // 2)


def _pick_lane_tile(n, cap):
    """Largest multiple-of-128 divisor of n that is <= cap (or n itself if n % 128 != 0)."""
    if n % 128 != 0:
        return n
    t = min(n, max(128, (cap // 128) * 128))
    while n % t:
        t -= 128
    return t


# ----------------------------------------------------------------------------------
# Kernel 1: weighted softmax cross-entropy (F.cross_entropy with class weights)
#   logits_t : [L, C+1, N]   (classes on sublanes, N = B*Q on lanes, lane-dense layout)
#   tc       : [L, 1, N]     int32 target class ids
#   out      : [L, 1, 1]     per-head weighted-mean CE
# N is tiled (grid axis 1) with weighted-sum / weight accumulators and a pl.when finalize.
# ----------------------------------------------------------------------------------

def _weighted_ce_kernel(logits_ref, tc_ref, out_ref, wnll_acc, w_acc, *, num_classes, eos_coef):
    n = pl.program_id(1)

    @pl.when(n == 0)
    def _():
        wnll_acc[...] = jnp.zeros_like(wnll_acc)
        w_acc[...] = jnp.zeros_like(w_acc)

    x = logits_ref[0].astype(jnp.float32)                       # [C1, TN]
    tc = tc_ref[0]                                              # [1, TN] int32
    cls = jax.lax.broadcasted_iota(jnp.int32, x.shape, 0)       # class id per sublane
    sel = (cls == tc).astype(jnp.float32)                       # in-kernel "one-hot"
    m = jnp.max(x, axis=0, keepdims=True)
    lse = m + jnp.log(jnp.sum(jnp.exp(x - m), axis=0, keepdims=True))
    x_t = jnp.sum(x * sel, axis=0, keepdims=True)
    nll = lse - x_t                                             # [1, TN]
    w = jnp.where(tc == num_classes, eos_coef, 1.0)             # empty_weight, in-kernel
    wnll_acc[...] += jnp.reshape(jnp.sum(w * nll), (1, 1))
    w_acc[...] += jnp.reshape(jnp.sum(w), (1, 1))

    @pl.when(n == pl.num_programs(1) - 1)
    def _():
        out_ref[...] = jnp.reshape(wnll_acc[...] / w_acc[...], (1, 1, 1))


@functools.partial(jax.jit, static_argnums=(2, 3))
def weighted_cross_entropy(logits_t, target_classes, num_classes, eos_coef):
    """logits_t: [L, C1, N] f32, target_classes: [L, 1, N] int32 -> [L] losses."""
    L, C1, N = logits_t.shape
    TN = _pick_lane_tile(N, 2048)
    kernel = functools.partial(_weighted_ce_kernel,
                               num_classes=num_classes, eos_coef=float(eos_coef))
    ce = pl.CostEstimate(flops=int(L * N * (6 * C1 + 12)),
                         transcendentals=int(L * N * (C1 + 1)),
                         bytes_accessed=int(L * N * (C1 * 4 + 4) + L * 4))
    out = pl.pallas_call(
        kernel,
        out_shape=jax.ShapeDtypeStruct((L, 1, 1), jnp.float32),
        grid=(L, N // TN),
        in_specs=[pl.BlockSpec((1, C1, TN), lambda l, n: (l, 0, n)),
                  pl.BlockSpec((1, 1, TN), lambda l, n: (l, 0, n))],
        out_specs=pl.BlockSpec((1, 1, 1), lambda l, n: (l, 0, 0)),
        scratch_shapes=[pltpu.VMEM((1, 1), jnp.float32),
                        pltpu.VMEM((1, 1), jnp.float32)],
        compiler_params=pltpu.CompilerParams(
            dimension_semantics=("parallel", "arbitrary"),
            vmem_limit_bytes=_vmem_limit_bytes()),
        cost_estimate=ce,
    )(logits_t, target_classes)
    return out[:, 0, 0]


# ----------------------------------------------------------------------------------
# Kernel 2: sigmoid-BCE + dice loss over sampled points, batched over heads, gridded
# over point tiles with VPU-only [M, 128] partial-sum accumulators; the single
# cross-lane reduce and the dice combine happen in the pl.when finalize.
#   point_logits: [L, M, P] f32 ; point_labels: [L, M, P] bf16
# num_masks is applied OUTSIDE the kernel as a runtime scalar (no recompile).
# ----------------------------------------------------------------------------------

def _mask_point_loss_kernel(logits_ref, labels_ref, bce_out_ref, dice_out_ref,
                            bce_acc, inter_acc, s_acc, y_acc, *, lane_chunks):
    p = pl.program_id(1)

    @pl.when(p == 0)
    def _():
        bce_acc[...] = jnp.zeros_like(bce_acc)
        inter_acc[...] = jnp.zeros_like(inter_acc)
        s_acc[...] = jnp.zeros_like(s_acc)
        y_acc[...] = jnp.zeros_like(y_acc)

    x = logits_ref[0].astype(jnp.float32)                       # [M, TP]
    y = labels_ref[0].astype(jnp.float32)                       # [M, TP] (bf16 input)

    # share one exp(-|x|) between the softplus term and the sigmoid (EUP pressure /3 -> /2)
    e = jnp.exp(-jnp.abs(x))
    bce = jnp.maximum(x, 0.0) - x * y + jnp.log1p(e)
    inv_1pe = pl.reciprocal(1.0 + e, approx=True)
    s = jnp.where(x >= 0.0, inv_1pe, e * inv_1pe)               # sigmoid(x)

    def psum(v):
        # VPU-only partial sums into a 128-lane-wide accumulator (static lane-chunk adds);
        # the cross-lane (XLU) reduce is deferred to the finalize branch.
        if lane_chunks is None:
            return jnp.sum(v, axis=-1, keepdims=True)
        acc = v[:, 0:128]
        for k in range(1, lane_chunks):
            acc = acc + v[:, k * 128:(k + 1) * 128]
        return acc

    bce_acc[...] += psum(bce)
    inter_acc[...] += psum(s * y)
    s_acc[...] += psum(s)
    y_acc[...] += psum(y)

    @pl.when(p == pl.num_programs(1) - 1)
    def _():
        bce_out_ref[...] = jnp.reshape(jnp.sum(bce_acc[...]), (1, 1, 1))
        inter = jnp.sum(inter_acc[...], axis=-1)                # [M]
        ssum = jnp.sum(s_acc[...], axis=-1)
        ysum = jnp.sum(y_acc[...], axis=-1)
        dice = 1.0 - (2.0 * inter + 1.0) / (ssum + ysum + 1.0)
        dice_out_ref[...] = jnp.reshape(jnp.sum(dice), (1, 1, 1))


@jax.jit
def mask_point_losses(point_logits, point_labels, num_masks):
    """point_logits [L,M,P] f32, point_labels [L,M,P] (bf16); num_masks runtime scalar."""
    L, M, P = point_logits.shape
    itemsz = point_logits.dtype.itemsize + point_labels.dtype.itemsize
    # cap the point tile so 2 inputs x 2 pipeline buffers stay well inside the VMEM budget
    budget = _vmem_limit_bytes() // 4
    cap = max(128, min(2048, budget // (2 * itemsz * max(M, 8))))
    TP = _pick_lane_tile(P, cap)
    lane_chunks = TP // 128 if TP % 128 == 0 else None
    acc_w = 128 if lane_chunks is not None else 1
    kernel = functools.partial(_mask_point_loss_kernel, lane_chunks=lane_chunks)
    ce = pl.CostEstimate(flops=int(L * M * P * 14),
                         transcendentals=int(L * M * P * 2),
                         bytes_accessed=int(L * M * P * itemsz + L * 8))
    bce_tot, dice_tot = pl.pallas_call(
        kernel,
        out_shape=(jax.ShapeDtypeStruct((L, 1, 1), jnp.float32),
                   jax.ShapeDtypeStruct((L, 1, 1), jnp.float32)),
        grid=(L, P // TP),
        in_specs=[pl.BlockSpec((1, M, TP), lambda l, p: (l, 0, p)),
                  pl.BlockSpec((1, M, TP), lambda l, p: (l, 0, p))],
        out_specs=(pl.BlockSpec((1, 1, 1), lambda l, p: (l, 0, 0)),
                   pl.BlockSpec((1, 1, 1), lambda l, p: (l, 0, 0))),
        scratch_shapes=[pltpu.VMEM((M, acc_w), jnp.float32) for _ in range(4)],
        compiler_params=pltpu.CompilerParams(
            dimension_semantics=("parallel", "arbitrary"),
            vmem_limit_bytes=_vmem_limit_bytes()),
        cost_estimate=ce,
    )(point_logits, point_labels)
    nm = jnp.asarray(num_masks, jnp.float32)
    loss_mask = bce_tot[:, 0, 0] / (jnp.float32(P) * nm)        # mean over points, sum/num_masks
    loss_dice = dice_tot[:, 0, 0] / nm
    return loss_mask, loss_dice


# ----------------------------------------------------------------------------------
# Kernel 3: cosine-embedding similarity loss between consecutive frames, batched over
# all middles_attn_mask entries (leading "parallel" axis E) and gridded over D tiles.
#   attn: [E, bs, n_frame, D]
# ----------------------------------------------------------------------------------

def _cosine_sim_loss_kernel(attn_ref, out_ref, sqn_acc, dot_acc):
    d = pl.program_id(1)

    @pl.when(d == 0)
    def _():
        sqn_acc[...] = jnp.zeros_like(sqn_acc)
        dot_acc[...] = jnp.zeros_like(dot_acc)

    x = attn_ref[0].astype(jnp.float32)                         # [bs, F, TD], loaded once
    sqn_acc[...] += jnp.sum(x * x, axis=-1)                     # per-frame ||.||^2
    dot_acc[...] += jnp.sum(x[:, :-1, :] * x[:, 1:, :], axis=-1)  # consecutive-pair dots

    @pl.when(d == pl.num_programs(1) - 1)
    def _():
        sqn = sqn_acc[...]
        # torch F.cosine_similarity clamps each norm separately before dividing.
        na = jnp.maximum(jnp.sqrt(sqn[:, :-1]), 1e-8)
        nb = jnp.maximum(jnp.sqrt(sqn[:, 1:]), 1e-8)
        cos = dot_acc[...] / (na * nb)
        tl = 1.0 - cos                                          # CosineEmbeddingLoss, target=+1
        bs, nf1 = tl.shape
        out_ref[...] = jnp.reshape(jnp.sum(tl * jnp.exp(-tl)) / (bs * nf1), (1, 1, 1))


@functools.partial(jax.jit, static_argnums=(1,))
def batched_cosine_similarity_loss(attn_stack, n_frame):
    """attn_stack: [E, bs*n_frame, Q, HW] -> [E] self-weighted cosine losses."""
    E, BnF, Q, HW = attn_stack.shape
    bs = BnF // n_frame
    D = Q * HW
    x = attn_stack.reshape(E, bs, n_frame, D).astype(jnp.float32)
    TD = _pick_lane_tile(D, 4096)
    ce = pl.CostEstimate(flops=int(E * bs * n_frame * D * 4),
                         transcendentals=int(E * bs * n_frame * 2),
                         bytes_accessed=int(E * bs * n_frame * D * 4 + E * 4))
    out = pl.pallas_call(
        _cosine_sim_loss_kernel,
        out_shape=jax.ShapeDtypeStruct((E, 1, 1), jnp.float32),
        grid=(E, D // TD),
        in_specs=[pl.BlockSpec((1, bs, n_frame, TD), lambda e, d: (e, 0, 0, d))],
        out_specs=pl.BlockSpec((1, 1, 1), lambda e, d: (e, 0, 0)),
        scratch_shapes=[pltpu.VMEM((bs, n_frame), jnp.float32),
                        pltpu.VMEM((bs, n_frame - 1), jnp.float32)],
        compiler_params=pltpu.CompilerParams(
            dimension_semantics=("parallel", "arbitrary"),
            vmem_limit_bytes=_vmem_limit_bytes()),
        cost_estimate=ce,
    )(x)
    return out[:, 0, 0]


# ------------------------- JAX glue (sampling) -------------------------

def calculate_uncertainty(logits):
    # uncertainty = -|logit|
    return -jnp.abs(logits)


def point_sample(inp, coords):
    """Bilinear grid_sample(2*coords-1, align_corners=False, zeros padding) as a GATHER:
    4 corner fetches via take_along_axis on the flattened image, fused with bilinear weights.
    inp: [N, C, H, W], coords: [N, P, 2] in [0, 1] (x, y). Returns [N, C, P]."""
    N, C, H, W = inp.shape
    P = coords.shape[1]
    x = coords[..., 0].astype(jnp.float32) * W - 0.5
    y = coords[..., 1].astype(jnp.float32) * H - 0.5
    x0 = jnp.floor(x)
    y0 = jnp.floor(y)
    wx1 = x - x0
    wx0 = 1.0 - wx1
    wy1 = y - y0
    wy0 = 1.0 - wy1
    img = inp.reshape(N, C, H * W).astype(jnp.float32)
    out = jnp.zeros((N, C, P), jnp.float32)
    for cx, cy, w in ((x0, y0, wx0 * wy0), (x0 + 1.0, y0, wx1 * wy0),
                      (x0, y0 + 1.0, wx0 * wy1), (x0 + 1.0, y0 + 1.0, wx1 * wy1)):
        valid = ((cx >= 0) & (cx <= W - 1) & (cy >= 0) & (cy <= H - 1)).astype(jnp.float32)
        flat = (jnp.clip(cy, 0, H - 1).astype(jnp.int32) * W
                + jnp.clip(cx, 0, W - 1).astype(jnp.int32))                 # [N, P]
        vals = jnp.take_along_axis(img, flat[:, None, :], axis=2)           # [N, C, P]
        out = out + (w * valid)[:, None, :] * vals
    return out.astype(inp.dtype)


def _sample_points_single(key, src_masks, target_masks, *, num_points,
                          oversample_ratio, importance_sample_ratio):
    """src_masks/target_masks: [M, 1, H, W]. Returns (point_logits, point_labels): [M, P]."""
    M = src_masks.shape[0]
    num_sampled = int(num_points * oversample_ratio)
    num_uncertain = int(importance_sample_ratio * num_points)
    num_random = num_points - num_uncertain
    k1, k2 = jax.random.split(key)
    coords = jax.random.uniform(k1, (M, num_sampled, 2), dtype=jnp.float32)
    logits_over = point_sample(src_masks, coords)[:, 0, :]                  # [M, num_sampled]
    uncert = calculate_uncertainty(logits_over)
    idx = jax.lax.top_k(uncert, num_uncertain)[1]                           # [M, num_uncertain]
    picked_coords = jnp.take_along_axis(coords, idx[..., None], axis=1)
    # reuse the uncertainty-pass logits for the importance-selected points (same coords,
    # same bilinear sample) -> no second full sampling pass over the predicted masks.
    point_logits = jnp.take_along_axis(logits_over, idx, axis=1)
    if num_random > 0:
        rand_coords = jax.random.uniform(k2, (M, num_random, 2), dtype=jnp.float32)
        rand_logits = point_sample(src_masks, rand_coords)[:, 0, :]
        picked_coords = jnp.concatenate([picked_coords, rand_coords], axis=1)
        point_logits = jnp.concatenate([point_logits, rand_logits], axis=1)
    point_labels = point_sample(target_masks, picked_coords)[:, 0, :]       # [M, P]
    return point_logits, point_labels


@functools.partial(jax.jit, static_argnums=(3, 4, 5))
def batched_sample_point_logits(keys, src_masks, target_masks, num_points,
                                oversample_ratio, importance_sample_ratio):
    """Vmapped over the head axis L (main + aux): one dispatch / one top_k for all heads."""
    fn = functools.partial(_sample_points_single, num_points=num_points,
                           oversample_ratio=oversample_ratio,
                           importance_sample_ratio=importance_sample_ratio)
    point_logits, point_labels = jax.vmap(fn)(keys, src_masks, target_masks)
    # bf16 labels halve the HBM->VMEM DMA into the mask-loss kernel (labels are ~binary).
    return point_logits, point_labels.astype(jnp.bfloat16)


# ------------------------- Criterion -------------------------

class SetCriterionSSPallas:
    def __init__(self, num_classes, weight_dict, eos_coef, losses,
                 num_points, oversample_ratio, importance_sample_ratio, matcher=None):
        self.num_classes = num_classes
        self.matcher = matcher
        self.weight_dict = weight_dict
        self.eos_coef = float(eos_coef)
        self.losses = losses
        self.num_points = num_points
        self.oversample_ratio = oversample_ratio
        self.importance_sample_ratio = importance_sample_ratio

    def _match(self, outputs, targets):
        # TODO(synk): Hungarian matcher (scipy linear_sum_assignment) has no clean Pallas
        # equivalent; deterministic identity matching is used here instead.
        return [(np.arange(len(t['labels'])), np.arange(len(t['labels']))) for t in targets]

    # ---- batched (over main + aux heads) loss computations ----

    def _batched_loss_labels(self, heads, targets, head_indices):
        L = len(heads)
        B, Q, C1 = heads[0]['pred_logits'].shape
        # produce the lane-dense [L, C1, N] layout directly (no separate transpose pass)
        logits_t = jnp.stack(
            [jnp.transpose(h['pred_logits'].astype(jnp.float32).reshape(B * Q, C1))
             for h in heads], axis=0)                                       # [L, C1, N]
        tc_all = np.full((L, B, Q), self.num_classes, dtype=np.int32)
        for l, indices in enumerate(head_indices):
            for b, (src, tgt) in enumerate(indices):
                labels = np.asarray(targets[b]['labels'])
                tc_all[l, b, np.asarray(src)] = labels[np.asarray(tgt)]
        tc = jnp.asarray(tc_all.reshape(L, 1, B * Q))
        return weighted_cross_entropy(logits_t, tc, self.num_classes, self.eos_coef)  # [L]

    def _batched_loss_masks(self, heads, targets, head_indices, num_masks, key):
        src_list, tgt_list = [], []
        for head, indices in zip(heads, head_indices):
            pred_masks = head['pred_masks']                                 # [B, Q, H, W]
            batch_idx = np.concatenate(
                [np.full(len(src), b, dtype=np.int32) for b, (src, _) in enumerate(indices)])
            src_idx = np.concatenate([np.asarray(src) for src, _ in indices]).astype(np.int32)
            src_masks = pred_masks[jnp.asarray(batch_idx), jnp.asarray(src_idx)][:, None]
            target_masks = jnp.concatenate(
                [jnp.asarray(targets[b]['masks'])[np.asarray(tgt)]
                 for b, (_, tgt) in enumerate(indices)], axis=0
            ).astype(src_masks.dtype)[:, None]
            src_list.append(src_masks)
            tgt_list.append(target_masks)
        src_stacked = jnp.stack(src_list, axis=0)                           # [L, M, 1, H, W]
        tgt_stacked = jnp.stack(tgt_list, axis=0)
        keys = jax.random.split(key, len(heads))
        point_logits, point_labels = batched_sample_point_logits(
            keys, src_stacked, tgt_stacked, self.num_points,
            self.oversample_ratio, self.importance_sample_ratio)            # [L, M, P]
        return mask_point_losses(point_logits, point_labels, num_masks)

    def get_similarity_loss(self, middle_attn_mask, cosine_weight=None, n_frame=5):
        # cosine_weight is always None in forward(); exp(-loss) self-weighting is in-kernel.
        val = batched_cosine_similarity_loss(middle_attn_mask[None], n_frame)[0]
        return {'loss_cosine': val}

    # ---- forward ----

    def forward(self, outputs, targets, vid_temporal_mask_flag, gt_temporal_mask_flag, key):
        del vid_temporal_mask_flag  # unused by the reference forward
        outputs = dict(outputs)
        sel = jnp.asarray(np.where(np.asarray(gt_temporal_mask_flag) == 1)[0])
        for output_key in ['pred_logits', 'pred_masks', 'aux_outputs']:
            if isinstance(outputs[output_key], list):
                outputs[output_key] = [
                    {k: jnp.take(v, sel, axis=0) for k, v in aux.items()}
                    for aux in outputs[output_key]]
            else:
                outputs[output_key] = jnp.take(outputs[output_key], sel, axis=0)

        outputs_without_aux = {k: v for k, v in outputs.items()
                               if k not in ('aux_outputs', 'middles_attn_mask')}
        indices = self._match(outputs_without_aux, targets)

        # TODO(synk): distributed all_reduce / get_world_size() skipped (single host).
        num_masks = max(float(sum(len(t['labels']) for t in targets)), 1.0)

        for loss in self.losses:
            if loss not in ('labels', 'masks'):
                raise ValueError(f'do you really want to compute {loss} loss?')

        aux_list = outputs.get('aux_outputs', [])
        heads = [outputs_without_aux] + list(aux_list)                      # main + aux heads
        head_indices = [indices] + [self._match(aux, targets) for aux in aux_list]
        n_heads = len(heads)

        def name(base, i):
            return base if i == 0 else f'{base}_{i - 1}'

        losses = {}
        if 'labels' in self.losses:
            ce = self._batched_loss_labels(heads, targets, head_indices)    # [n_heads]
            for i in range(n_heads):
                losses[name('loss_ce', i)] = ce[i]
        if 'masks' in self.losses:
            lm, ld = self._batched_loss_masks(heads, targets, head_indices, num_masks, key)
            for i in range(n_heads):
                losses[name('loss_mask', i)] = lm[i]
                losses[name('loss_dice', i)] = ld[i]

        if 'middles_attn_mask' in outputs:
            mids = outputs['middles_attn_mask']
            groups = {}
            for i, m in enumerate(mids):
                groups.setdefault(tuple(m.shape), []).append(i)
            for _, idxs in groups.items():
                stacked = jnp.stack([mids[i] for i in idxs], axis=0)        # [E, bs*F, Q, HW]
                vals = batched_cosine_similarity_loss(stacked, 5)           # one launch/shape
                for j, i in enumerate(idxs):
                    losses[f'loss_cosine_{i}'] = vals[j]
        return losses


# ------------------------- main -------------------------

if __name__ == "__main__":
    key = jax.random.PRNGKey(0)
    keys = jax.random.split(key, 12)

    num_classes = 4
    B0, Q, H, W = 4, 8, 16, 16          # frames, queries, mask spatial
    n_frame, bs_mid = 5, 2              # middle-attn: bs_mid * n_frame rows
    num_points = 128

    outputs = {
        'pred_logits': jax.random.normal(keys[0], (B0, Q, num_classes + 1), jnp.float32),
        'pred_masks': jax.random.normal(keys[1], (B0, Q, H, W), jnp.float32),
        'aux_outputs': [{
            'pred_logits': jax.random.normal(keys[2], (B0, Q, num_classes + 1), jnp.float32),
            'pred_masks': jax.random.normal(keys[3], (B0, Q, H, W), jnp.float32),
        }],
        'middles_attn_mask': [
            jax.random.normal(keys[4], (bs_mid * n_frame, Q, H * W), jnp.float32)
        ],
    }

    gt_temporal_mask_flag = np.array([1, 0, 1, 1], dtype=np.int32)
    vid_temporal_mask_flag = np.ones((B0,), dtype=np.int32)
    n_sel = int((gt_temporal_mask_flag == 1).sum())

    targets = []
    for b in range(n_sel):
        lab = np.asarray(jax.random.randint(keys[5 + b], (2,), 0, num_classes))
        msk = (jax.random.uniform(keys[8 + b], (2, H, W)) > 0.5).astype(jnp.float32)
        targets.append({'labels': lab, 'masks': msk})

    criterion = SetCriterionSSPallas(
        num_classes=num_classes, weight_dict={}, eos_coef=0.1,
        losses=['labels', 'masks'], num_points=num_points,
        oversample_ratio=3, importance_sample_ratio=0.75)

    losses = criterion.forward(outputs, targets, vid_temporal_mask_flag,
                               gt_temporal_mask_flag, key=keys[11])
    losses = {k: jax.block_until_ready(v) for k, v in losses.items()}
    expected = {'loss_ce', 'loss_mask', 'loss_dice',
                'loss_ce_0', 'loss_mask_0', 'loss_dice_0', 'loss_cosine_0'}
    assert expected.issubset(losses.keys()), sorted(losses.keys())
    for k, v in sorted(losses.items()):
        assert np.isfinite(float(v)), f"non-finite loss {k}"
    print("KERNEL_OK")
</pallas_src>

<mosaic_0001>
module attributes {stable_mosaic.version = 11 : i64} {
  func.func @_weighted_ce_kernel(%arg0: i32, %arg1: i32, %arg2: memref<1x5x24xf32, #tpu.memory_space<vmem>>, %arg3: memref<1x1x24xi32, #tpu.memory_space<vmem>>, %arg4: memref<1x1x1xf32, #tpu.memory_space<vmem>>, %arg5: memref<1x1xf32, #tpu.memory_space<vmem>>, %arg6: memref<1x1xf32, #tpu.memory_space<vmem>>) attributes {dimension_semantics = [#tpu.dimension_semantics<parallel>, #tpu.dimension_semantics<arbitrary>], iteration_bounds = array<i64: 2, 1>, scalar_prefetch = 0 : i64, scratch_operands = 2 : i64, tpu.core_type = #tpu.core_type<tc>, window_params = [{transform_indices = @transform_0, window_bounds = array<i64: 1, 5, 24>}, {transform_indices = @transform_1, window_bounds = array<i64: 1, 1, 24>}, {transform_indices = @transform_2, window_bounds = array<i64: 1, 1, 1>}]} {
    %c0_i32 = arith.constant 0 : i32
    %0 = arith.cmpi eq, %arg1, %c0_i32 : i32
    %1 = arith.extui %0 : i1 to i32
    %c0_i32_0 = arith.constant 0 : i32
    %2 = arith.cmpi ne, %1, %c0_i32_0 : i32
    scf.if %2 {
      %cst_22 = arith.constant 0.000000e+00 : f32
      %50 = vector.broadcast %cst_22 : f32 to vector<1x1xf32>
      %c0_23 = arith.constant 0 : index
      %c0_24 = arith.constant 0 : index
      %51 = vector.load %arg5[%c0_23, %c0_24] : memref<1x1xf32, #tpu.memory_space<vmem>>, vector<1x1xf32>
      tpu.vector_store %arg5[%c0_23, %c0_24], %50 {strides = array<i32>} : memref<1x1xf32, #tpu.memory_space<vmem>>, vector<1x1xf32>,
      %cst_25 = arith.constant 0.000000e+00 : f32
      %52 = vector.broadcast %cst_25 : f32 to vector<1x1xf32>
      %c0_26 = arith.constant 0 : index
      %c0_27 = arith.constant 0 : index
      %53 = vector.load %arg6[%c0_26, %c0_27] : memref<1x1xf32, #tpu.memory_space<vmem>>, vector<1x1xf32>
      tpu.vector_store %arg6[%c0_26, %c0_27], %52 {strides = array<i32>} : memref<1x1xf32, #tpu.memory_space<vmem>>, vector<1x1xf32>,
    } else {
    }
    %c0 = arith.constant 0 : index
    %c0_1 = arith.constant 0 : index
    %c0_2 = arith.constant 0 : index
    %3 = vector.load %arg2[%c0, %c0_1, %c0_2] : memref<1x5x24xf32, #tpu.memory_space<vmem>>, vector<1x5x24xf32>
    %4 = vector.shape_cast %3 : vector<1x5x24xf32> to vector<5x24xf32>
    %c0_3 = arith.constant 0 : index
    %c0_4 = arith.constant 0 : index
    %c0_5 = arith.constant 0 : index
    %5 = vector.load %arg3[%c0_3, %c0_4, %c0_5] : memref<1x1x24xi32, #tpu.memory_space<vmem>>, vector<1x1x24xi32>
    %6 = vector.shape_cast %5 : vector<1x1x24xi32> to vector<1x24xi32>
    %7 = tpu.iota {dimensions = array<i32: 0>} : vector<5x24xi32>
    %8 = vector.broadcast %6 : vector<1x24xi32> to vector<5x24xi32>
    %9 = arith.cmpi eq, %7, %8 : vector<5x24xi32>
    %10 = arith.extui %9 : vector<5x24xi1> to vector<5x24xi32>
    %11 = arith.sitofp %10 : vector<5x24xi32> to vector<5x24xf32>
    %cst = arith.constant dense<0xFF800000> : vector<24xf32>
    %12 = vector.multi_reduction <maximumf>, %4, %cst [0] : vector<5x24xf32> to vector<24xf32>
    %13 = vector.shape_cast %12 : vector<24xf32> to vector<1x24xf32>
    %14 = vector.broadcast %13 : vector<1x24xf32> to vector<5x24xf32>
    %15 = arith.subf %4, %14 : vector<5x24xf32>
    %16 = math.exp %15 : vector<5x24xf32>
    %cst_6 = arith.constant dense<0.000000e+00> : vector<24xf32>
    %17 = vector.multi_reduction <add>, %16, %cst_6 [0] : vector<5x24xf32> to vector<24xf32>
    %18 = vector.shape_cast %17 : vector<24xf32> to vector<1x24xf32>
    %19 = math.log %18 : vector<1x24xf32>
    %20 = arith.addf %13, %19 : vector<1x24xf32>
    %21 = arith.mulf %4, %11 : vector<5x24xf32>
    %cst_7 = arith.constant dense<0.000000e+00> : vector<24xf32>
    %22 = vector.multi_reduction <add>, %21, %cst_7 [0] : vector<5x24xf32> to vector<24xf32>
    %23 = vector.shape_cast %22 : vector<24xf32> to vector<1x24xf32>
    %24 = arith.subf %20, %23 : vector<1x24xf32>
    %c4_i32 = arith.constant 4 : i32
    %25 = vector.broadcast %c4_i32 : i32 to vector<1x24xi32>
    %26 = arith.cmpi eq, %6, %25 : vector<1x24xi32>
    %cst_8 = arith.constant 1.000000e-01 : f32
    %cst_9 = arith.constant 1.000000e+00 : f32
    %27 = vector.broadcast %cst_8 : f32 to vector<1x24xf32>
    %28 = vector.broadcast %cst_9 : f32 to vector<1x24xf32>
    %29 = arith.select %26, %27, %28 : vector<1x24xi1>, vector<1x24xf32>
    %c0_10 = arith.constant 0 : index
    %c0_11 = arith.constant 0 : index
    %30 = vector.load %arg5[%c0_10, %c0_11] : memref<1x1xf32, #tpu.memory_space<vmem>>, vector<1x1xf32>
    %31 = arith.mulf %29, %24 : vector<1x24xf32>
    %32 = vector.shape_cast %31 : vector<1x24xf32> to vector<1x1x24xf32>
    %cst_12 = arith.constant dense<0.000000e+00> : vector<1xf32>
    %33 = vector.multi_reduction <add>, %32, %cst_12 [1, 2] : vector<1x1x24xf32> to vector<1xf32>
    %34 = vector.shape_cast %33 : vector<1xf32> to vector<1x1x1xf32>
    %35 = vector.extract %34[0, 0, 0] : f32 from vector<1x1x1xf32>
    %36 = vector.broadcast %35 : f32 to vector<1x1xf32>
    %37 = arith.addf %30, %36 : vector<1x1xf32>
    %c0_13 = arith.constant 0 : index
    %c0_14 = arith.constant 0 : index
    %38 = vector.load %arg5[%c0_13, %c0_14] : memref<1x1xf32, #tpu.memory_space<vmem>>, vector<1x1xf32>
    tpu.vector_store %arg5[%c0_13, %c0_14], %37 {strides = array<i32>} : memref<1x1xf32, #tpu.memory_space<vmem>>, vector<1x1xf32>,
    %c0_15 = arith.constant 0 : index
    %c0_16 = arith.constant 0 : index
    %39 = vector.load %arg6[%c0_15, %c0_16] : memref<1x1xf32, #tpu.memory_space<vmem>>, vector<1x1xf32>
    %40 = vector.shape_cast %29 : vector<1x24xf32> to vector<1x1x24xf32>
    %cst_17 = arith.constant dense<0.000000e+00> : vector<1xf32>
    %41 = vector.multi_reduction <add>, %40, %cst_17 [1, 2] : vector<1x1x24xf32> to vector<1xf32>
    %42 = vector.shape_cast %41 : vector<1xf32> to vector<1x1x1xf32>
    %43 = vector.extract %42[0, 0, 0] : f32 from vector<1x1x1xf32>
    %44 = vector.broadcast %43 : f32 to vector<1x1xf32>
    %45 = arith.addf %39, %44 : vector<1x1xf32>
    %c0_18 = arith.constant 0 : index
    %c0_19 = arith.constant 0 : index
    %46 = vector.load %arg6[%c0_18, %c0_19] : memref<1x1xf32, #tpu.memory_space<vmem>>, vector<1x1xf32>
    tpu.vector_store %arg6[%c0_18, %c0_19], %45 {strides = array<i32>} : memref<1x1xf32, #tpu.memory_space<vmem>>, vector<1x1xf32>,
    %c0_i32_20 = arith.constant 0 : i32
    %47 = arith.cmpi eq, %arg1, %c0_i32_20 : i32
    %48 = arith.extui %47 : i1 to i32
    %c0_i32_21 = arith.constant 0 : i32
    %49 = arith.cmpi ne, %48, %c0_i32_21 : i32
    scf.if %49 {
      %c0_22 = arith.constant 0 : index
      %c0_23 = arith.constant 0 : index
      %50 = vector.load %arg5[%c0_22, %c0_23] : memref<1x1xf32, #tpu.memory_space<vmem>>, vector<1x1xf32>
      %c0_24 = arith.constant 0 : index
      %c0_25 = arith.constant 0 : index
      %51 = vector.load %arg6[%c0_24, %c0_25] : memref<1x1xf32, #tpu.memory_space<vmem>>, vector<1x1xf32>
      %52 = arith.divf %50, %51 : vector<1x1xf32>
      %53 = vector.shape_cast %52 : vector<1x1xf32> to vector<1x1x1xf32>
      %c0_26 = arith.constant 0 : index
      %c0_27 = arith.constant 0 : index
      %c0_28 = arith.constant 0 : index
      %54 = vector.load %arg4[%c0_26, %c0_27, %c0_28] : memref<1x1x1xf32, #tpu.memory_space<vmem>>, vector<1x1x1xf32>
      tpu.vector_store %arg4[%c0_26, %c0_27, %c0_28], %53 {strides = array<i32>} : memref<1x1x1xf32, #tpu.memory_space<vmem>>, vector<1x1x1xf32>,
    } else {
    }
    return
  }
  func.func @transform_0(%arg0: i32, %arg1: i32) -> (i32, i32, i32) {
    %c0_i32 = arith.constant 0 : i32
    %c0_i32_0 = arith.constant 0 : i32
    return %arg0, %c0_i32, %arg1 : i32, i32, i32
  }
  func.func @transform_1(%arg0: i32, %arg1: i32) -> (i32, i32, i32) {
    %c0_i32 = arith.constant 0 : i32
    %c0_i32_0 = arith.constant 0 : i32
    return %arg0, %c0_i32, %arg1 : i32, i32, i32
  }
  func.func @transform_2(%arg0: i32, %arg1: i32) -> (i32, i32, i32) {
    %c0_i32 = arith.constant 0 : i32
    %c0_i32_0 = arith.constant 0 : i32
    %c0_i32_1 = arith.constant 0 : i32
    return %arg0, %c0_i32, %c0_i32_0 : i32, i32, i32
  }
}

</mosaic_0001>

<bundles_post_ra>
// kernel: weighted_cross_entropy.1
= control target key start
LH: loop header
LB: loop body
LE: loop exit
PB: predicated region body
PF: predicated region fallthrough
CT: control target
= control target key end

     0   :  { %s441_s9 = smov 0   ;;  %s443_s10 = smov 0   ;;  %s490_s0 = inlined_call_operand.vmem [shape: f32[2,5,24], index: 0, kind: input, shape index: {}]   ;;  %s491_s1 = inlined_call_operand.vmem [shape: s32[2,1,24], index: 1, kind: input, shape index: {}]   ;;  %s492_s2 = inlined_call_operand.vmem [shape: f32[2,1,1], index: 2, kind: output, shape index: {}]  }
   0x1   :  { %s445_s11 = smov 0  }
   0x2 LB: > { %s24_s12 = sadd.s32 1, %s418_s10  ;;  %p358_p0 = scmp.ge.s32.totalorder %s422_s11, 1  ;;  %s422_s11 = sphi %s445_s11, %s12_s11   ;;  %s418_s10 = sphi %s443_s10, %s494_s10   ;;  %s414_s9 = sphi %s441_s9, %s493_s9  }
   0x3   : > { %p26_p1 = scmp.ge.s32.totalorder %s24_s12, 2  ;;  %p141_p2 = scmp.lt.s32.totalorder %s422_s11, 3 }
   0x5   : > { %s496_s12 = smov (%p26_p1, %s24_s12), 0  ;;  %p142_p3 = pnand %p358_p0, %p141_p2 }
   0x6   : > { %p169_p4 = scmp.lt.s32.totalorder (!%p142_p3), %s414_s9, 1 }
   0x7   : > { %145 = sbr.rel (%p142_p3) target bundleno = 286 (0x11e), region = 28 }
   0xc   : > { %s498_s9 = smov (!%p169_p4, %s414_s9), 1  ;;  %vm200_vm0 = vcmask 192512   ;;  %v194_v3 = vlaneseq  ;;  %v424_v12 = vmov 0.0   ;;  %v425_v35 = vmov 1.0  }
   0xd   : > { %s359_s13 = sshll.u32 %s498_s9, 3  ;;  %s181_s19 = scalar_lea.vmem %s491_s1, %s498_s9  ;;  %vm234_vm3 = vcmask 188416   ;;  %vm189_vm4 = vcmask 0  }
   0xe   : > { %s175_s16 = scalar_lea.vmem %s490_s0, %s359_s13  ;;  %v195_v6 = vshrl.u32 %v194_v3, 7  ;;  %v393_v7 = vld [vmem:[%s181_s19] ss:$0 sm:$0xff]  ;;  %190 = vst.msk [vmem:[#allocation2] sm:$0x1] %vm189_vm4, %v424_v12  ;;  %s184_s24 = scalar_lea.vmem %s492_s2, %s498_s9 }
   0xf   : > { %v192_v0 = vld [vmem:[%s175_s16] sm:$0x1f]  ;;  %191 = vst.msk [vmem:[#allocation3] sm:$0x1] %vm189_vm4, %v424_v12 }
  0x10   : > { %v201_v1 = vsel %vm200_vm0, %v192_v0, -inf  ;;  %vm197_vm1 = vcmp.eq.s32.totalorder %v195_v6, %v393_v7  ;;  %v193_v30 = vld [vmem:[%s181_s19] sm:$0x1] }
  0x11   : > { %v202_v2 = vrot.slane %v201_v1, 4  ;;  %v360_v13 = vsel %vm197_vm1, 1.0, %v424_v12  ;;  %vm230_vm2 = vcmp.eq.s32.totalorder %v193_v30, 4 }
  0x12   : > { %v221_v15 = vmul.f32 %v360_v13, %v192_v0  ;;  %v231_v36 = vsel %vm230_vm2, 0.1, %v425_v35 }
  0x13   : > { %v203_v4 = vmax.f32 %v201_v1, %v202_v2  ;;  %v250_v40 = vsel %vm234_vm3, %v231_v36, 0.0 }
  0x14   : > { %v222_v16 = vsel %vm200_vm0, %v221_v15, 0.0 }
  0x15   : > { %v204_v5 = vrot.slane %v203_v4, 2  ;;  %v223_v19 = vrot.slane %v222_v16, 4  ;;  %v232_v55 = vld [vmem:[#allocation2] sm:$0x1] }
  0x16   : > { %v249_v58 = vld [vmem:[#allocation3] sm:$0x1] }
  0x17   : > { %v205_v8 = vmax.f32 %v203_v4, %v204_v5  ;;  %v224_v22 = vadd.f32 %v223_v19, %v222_v16 }
  0x19   : > { %v206_v9 = vrot.slane %v205_v8, 1  ;;  %v225_v25 = vrot.slane %v224_v22, 2 }
  0x1b   : > { %v207_v10 = vmax.f32 %v205_v8, %v206_v9  ;;  %v226_v28 = vadd.f32 %v225_v25, %v224_v22 }
  0x1d   : > { %v208_v11 = vsub.f32 %v192_v0, %v207_v10  ;;  %v227_v29 = vrot.slane %v226_v28, 1 }
  0x1f   : > { %v209_v14 = vmul.f32 1.442695, %v208_v11  ;;  %v228_v33 = vadd.f32 %v227_v29, %v226_v28 }
  0x21   : > { %394 = vpow2.f32 %v209_v14 }
  0x27   : > { %v395_v17 = vpop.eup %394 }
  0x28   : > { %v211_v18 = vsel %vm200_vm0, %v395_v17, 0.0 }
  0x29   : > { %v212_v20 = vrot.slane %v211_v18, 4 }
  0x2b   : > { %v213_v21 = vadd.f32 %v212_v20, %v211_v18 }
  0x2d   : > { %v214_v23 = vrot.slane %v213_v21, 2 }
  0x2f   : > { %v215_v24 = vadd.f32 %v214_v23, %v213_v21 }
  0x31   : > { %v216_v26 = vrot.slane %v215_v24, 1 }
  0x33   : > { %v217_v27 = vadd.f32 %v216_v26, %v215_v24 }
  0x35   : > { %396 = vlog2.f32 %v217_v27 }
  0x3b   : > { %v397_v31 = vpop.eup %396 }
  0x3c   : > { %v219_v32 = vmul.f32 0.6931472, %v397_v31 }
  0x3e   : > { %v220_v34 = vadd.f32 %v219_v32, %v207_v10 }
  0x40   : > { %v229_v37 = vsub.f32 %v220_v34, %v228_v33 }
  0x42   : > { %v233_v38 = vmul.f32 %v231_v36, %v229_v37 }
  0x44   : > { %v235_v39 = vsel %vm234_vm3, %v233_v38, 0.0 }
  0x45   : > { %236 = vadd.xlane.f32.xlu0 %v235_v39 }
  0x4d   : > { %251 = vadd.xlane.f32.xlu0 %v250_v40 }
  0xb8   : > { %v237_v41 = vpop.xlane.xlu0 %236 }
  0xb9   : > { %v238_v42 = vrot.slane %v237_v41, 4 }
  0xbb   : > { %v239_v43 = vadd.f32 %v238_v42, %v237_v41 }
  0xbd   : > { %v240_v44 = vrot.slane %v239_v43, 2 }
  0xbf   : > { %v241_v45 = vadd.f32 %v240_v44, %v239_v43 }
  0xc0   : > { %v252_v46 = vpop.xlane.xlu0 %251 }
  0xc1   : > { %v253_v47 = vrot.slane %v252_v46, 4  ;;  %v242_v48 = vrot.slane %v241_v45, 1 }
  0xc3   : > { %v254_v49 = vadd.f32 %v253_v47, %v252_v46  ;;  %v243_v50 = vadd.f32 %v242_v48, %v241_v45 }
  0xc5   : > { %v255_v51 = vrot.slane %v254_v49, 2  ;;  %363 = vpush %v243_v50 }
  0xc7   : > { %v256_v52 = vadd.f32 %v255_v51, %v254_v49 }
  0xc9   : > { %v257_v53 = vrot.slane %v256_v52, 1 }
  0xcb   : > { %v258_v54 = vadd.f32 %v257_v53, %v256_v52 }
  0xcd   : > { %365 = vpush %v258_v54 }
  0xf6   : > { %s364_s20 = spop %363 }
  0xf7   : > { %v245_v56 = vstv %s364_s20 }
  0xf8   : > { %v246_v57 = vadd.f32 %v245_v56, %v232_v55 }
  0xfa   : > { %248 = vst.msk [vmem:[#allocation2] sm:$0x1] %vm189_vm4, %v246_v57 }
  0xfe   : > { %s366_s21 = spop %365 }
  0xff   : > { %v260_v59 = vstv %s366_s21 }
 0x100   : > { %v261_v60 = vadd.f32 %v260_v59, %v249_v58 }
 0x101   : > { %v266_v7 = vld [vmem:[#allocation2] sm:$0x1] }
 0x102   : > { %262 = vst.msk [vmem:[#allocation3] sm:$0x1] %vm189_vm4, %v261_v60 }
 0x109   : > { %v267_v61 = vld [vmem:[#allocation3] sm:$0x1] }
 0x10a   : > { %398 = vrcp.f32 %v267_v61  ;;  %v279_v1 = vand.u32 2147483648, %v267_v61  ;;  %v277_v3 = vand.u32 2147483647, %v267_v61  ;;  %vm273_vm6 = vweird.f32 %v267_v61 }
 0x10c   : > { %v280_v5 = vor.u32 1.1754944e-38, %v279_v1  ;;  %vm278_vm8 = vcmp.eq.f32.partialorder %v277_v3, 8.507059e+37 }
 0x110   : > { %v399_v62 = vpop.eup %398 }
 0x111   : > { %v269_v63 = vmul.f32 %v399_v62, %v267_v61  ;;  %vm274_vm5 = vweird.f32 %v399_v62 }
 0x112   : > { %vm275_vm7 = vmor %vm273_vm6, %vm274_vm5 }
 0x113   : > { %v270_v0 = vsub.f32 1.0, %v269_v63 }
 0x115   : > { %v271_v2 = vmul.f32 %v399_v62, %v270_v0 }
 0x117   : > { %v272_v4 = vadd.f32 %v399_v62, %v271_v2 }
 0x119   : > { %v276_v6 = vsel %vm275_vm7, %v399_v62, %v272_v4 }
 0x11a   : > { %v281_v8 = vsel %vm278_vm8, %v280_v5, %v276_v6 }
 0x11b   : > { %v282_v9 = vmul.f32 %v281_v8, %v266_v7 }
 0x11d   : > { %283 = vst.msk [vmem:[%s184_s24] sm:$0x1] %vm189_vm4, %v282_v9 }
 0x11e PF: > { %s12_s11 = sadd.s32 1, %s422_s11   ;;  %s493_s9 = smov %s418_s10 }
 0x11f   : > { %p9_p5 = scmp.ge.s32.totalorder %s12_s11, 4   ;;  %s494_s10 = smov %s496_s12 }
 0x121   :  { %11 = sbr.rel (!%p9_p5) target bundleno = 2 (0x2), region = 69 }

</bundles_post_ra>
